<compile_context>
chip_gen: v7x
topology: tpu7x:2x2x1
jax: 0.10.0
libtpu: 0.0.40
codegen_flags: <defaults>
</compile_context>

<pallas_src>
import functools
import numpy as np
import jax
import jax.numpy as jnp
from jax import lax
from jax.experimental import pallas as pl
from jax.experimental.pallas import tpu as pltpu


# ----------------------------------------------------------------------------
# Synthetic module configuration (mirrors ClassifierBlock.__init__ semantics)
# ----------------------------------------------------------------------------
PHASES = ["alpha", "beta", "gamma"]          # len(phases) = 3
NUM_INTERACTIONS = 2
NUM_FEATURES = 32                            # hidden_irreps[0].dim (e.g. 32x0e)
L_MAX = 1                                    # e.g. "32x0e + 32x1o"
LAYER_SIZES = [64, 32]
NUM_PHASES = len(PHASES)


def build_scalar_slabs():
    """The scalar-feature index list is a union of contiguous column ranges."""
    features_per_l = [(2 * l + 1) * NUM_FEATURES for l in range(L_MAX + 1)]
    total_features_per_block = sum(features_per_l)
    slabs = []
    curr = 0
    for _ in range(NUM_INTERACTIONS - 1):
        slabs.append((curr, features_per_l[0]))
        curr += total_features_per_block
    slabs.append((curr, NUM_FEATURES))
    return slabs, curr + NUM_FEATURES


SCALAR_SLABS, NODE_FEAT_DIM = build_scalar_slabs()
SCALAR_INDICES = np.concatenate(
    [np.arange(s, s + l, dtype=np.int32) for s, l in SCALAR_SLABS])
NUM_SCALAR = int(SCALAR_INDICES.shape[0])    # 64


# ----------------------------------------------------------------------------
# Pallas kernel: MLP -> node_logits -> (softmax * deltas), per-graph logit sum
# ----------------------------------------------------------------------------
def classifier_kernel(x_ref, batch_ref, w1_ref, b1_ref, w2_ref, b2_ref,
                      w3_ref, b3_ref, logits_ref, node_delta_ref, *, num_graphs):
    i = pl.program_id(0)

    # logits accumulator lives in VMEM across the whole node-axis sweep.
    @pl.when(i == 0)
    def _():
        logits_ref[...] = jnp.zeros_like(logits_ref)

    x = x_ref[...]                                                # [T, F0]

    # Linear + SiLU
    h = jnp.dot(x, w1_ref[...], preferred_element_type=jnp.float32) + b1_ref[...]
    h = h * jax.nn.sigmoid(h)
    # Linear + SiLU
    h = jnp.dot(h, w2_ref[...], preferred_element_type=jnp.float32) + b2_ref[...]
    h = h * jax.nn.sigmoid(h)
    # Final Linear -> node_deltas [T, P]
    node_deltas = jnp.dot(h, w3_ref[...], preferred_element_type=jnp.float32) + b3_ref[...]

    node_logits = -node_deltas                                    # [T, P]

    # softmax(node_logits - logsumexp(node_logits)) == softmax(node_logits)
    # (shift invariance); numerically stable form.
    m = jnp.max(node_logits, axis=-1, keepdims=True)
    e = jnp.exp(node_logits - m)
    denom = jnp.sum(e, axis=-1, keepdims=True)
    r = pl.reciprocal(denom, approx=True)
    r = r * (2.0 - denom * r)                 # one Newton step -> full f32 accuracy
    probs = e * r

    # node_delta = sum(probabilities * node_deltas, dim=-1), stored lane-dense.
    nd = jnp.sum(probs * node_deltas, axis=-1)                    # [T]
    node_delta_ref[...] = nd[None, :]                             # (1, T)

    # scatter_sum(node_logits, batch): build the per-tile one-hot directly in
    # [G, T] orientation (no transpose, no HBM one-hot). Padded tail rows carry
    # batch == num_graphs, matching no graph, and their features are zero.
    tile_n = node_logits.shape[0]
    batch_row = batch_ref[...]                                    # [1, T] int32
    gids = lax.broadcasted_iota(jnp.int32, (num_graphs, tile_n), 0)
    onehot = (gids == batch_row).astype(jnp.float32)              # [G, T]
    logits_ref[...] += jnp.dot(onehot, node_logits,
                               preferred_element_type=jnp.float32)


def classifier_forward(node_feats, batch, num_graphs, params, tile_n=1024):
    """node_feats: [N, NODE_FEAT_DIM] f32; batch: [N] int32; returns dict."""
    n = node_feats.shape[0]

    # Choose an effective tile size: multiple of 8 (sublane) and, when more
    # than one tile is needed, a multiple of 128 (lane-dense batch/node_delta).
    if n <= tile_n:
        tile_n = max(8, -(-n // 8) * 8)
    num_tiles = pl.cdiv(n, tile_n)
    n_pad = num_tiles * tile_n

    # Scalar-feature selection: two static contiguous slices + concat (no gather).
    scalar_feats = jnp.concatenate(
        [node_feats[:, s:s + l] for s, l in SCALAR_SLABS], axis=1)  # [N, NUM_SCALAR]

    # Pad the node axis. Padded rows: zero features, batch id == num_graphs.
    x = jnp.pad(scalar_feats, ((0, n_pad - n), (0, 0)))
    batch_padded = jnp.pad(batch.astype(jnp.int32), (0, n_pad - n),
                           constant_values=num_graphs)[None, :]     # [1, N_pad]

    w1, b1, w2, b2, w3, b3 = params
    resident = lambda shape: pl.BlockSpec(shape, lambda i: (0,) * len(shape))

    kernel = functools.partial(classifier_kernel, num_graphs=num_graphs)

    logits, node_delta = pl.pallas_call(
        kernel,
        out_shape=(
            jax.ShapeDtypeStruct((num_graphs, NUM_PHASES), jnp.float32),
            jax.ShapeDtypeStruct((1, n_pad), jnp.float32),
        ),
        grid=(num_tiles,),
        in_specs=[
            pl.BlockSpec((tile_n, NUM_SCALAR), lambda i: (i, 0)),   # activations
            pl.BlockSpec((1, tile_n), lambda i: (0, i)),            # batch ids
            resident(w1.shape), resident(b1.shape),
            resident(w2.shape), resident(b2.shape),
            resident(w3.shape), resident(b3.shape),
        ],
        out_specs=(
            pl.BlockSpec((num_graphs, NUM_PHASES), lambda i: (0, 0)),  # accumulator
            pl.BlockSpec((1, tile_n), lambda i: (0, i)),               # lane-dense
        ),
        compiler_params=pltpu.CompilerParams(
            dimension_semantics=("arbitrary",)),   # logits accumulate across tiles
    )(x, batch_padded, w1, b1, w2, b2, w3, b3)

    # TODO(synk): logits_forces requires autograd of logits w.r.t. data['positions']
    # through the upstream model graph (not part of this block); left as None.
    return {
        "logits": logits,
        "logits_forces": None,
        "logits_stress": None,
        "node_delta": node_delta[0, :n],
    }


# ----------------------------------------------------------------------------
# Deterministic parameter init + pure-JAX reference
# ----------------------------------------------------------------------------
def init_params(key):
    sizes = [NUM_SCALAR] + LAYER_SIZES + [NUM_PHASES]
    params = []
    for i in range(len(sizes) - 1):
        key, kw, kb = jax.random.split(key, 3)
        bound = 1.0 / np.sqrt(sizes[i])
        w = jax.random.uniform(kw, (sizes[i], sizes[i + 1]), jnp.float32, -bound, bound)
        b = jax.random.uniform(kb, (1, sizes[i + 1]), jnp.float32, -bound, bound)
        params.extend([w, b])
    return tuple(params)


def reference_forward(node_feats, batch, num_graphs, params):
    w1, b1, w2, b2, w3, b3 = params
    x = node_feats[:, SCALAR_INDICES]                # gather version (validates slices)
    h = x @ w1 + b1
    h = h * jax.nn.sigmoid(h)
    h = h @ w2 + b2
    h = h * jax.nn.sigmoid(h)
    deltas = h @ w3 + b3
    node_logits = -deltas
    norm = jax.scipy.special.logsumexp(node_logits, axis=-1, keepdims=True)
    probs = jax.nn.softmax(node_logits - norm, axis=-1)
    node_delta = jnp.sum(probs * deltas, axis=-1)
    logits = jax.ops.segment_sum(node_logits, batch, num_segments=num_graphs)
    return logits, node_delta


def check(node_feats, batch, num_graphs, params, tile_n):
    out = classifier_forward(node_feats, batch, num_graphs, params, tile_n=tile_n)
    jax.block_until_ready(out["logits"])
    jax.block_until_ready(out["node_delta"])
    ref_logits, ref_node_delta = reference_forward(node_feats, batch, num_graphs, params)
    np.testing.assert_allclose(np.asarray(out["logits"]), np.asarray(ref_logits),
                               rtol=1e-5, atol=1e-5)
    np.testing.assert_allclose(np.asarray(out["node_delta"]), np.asarray(ref_node_delta),
                               rtol=1e-5, atol=1e-5)


if __name__ == "__main__":
    key = jax.random.PRNGKey(0)
    key, kf1, kf2 = jax.random.split(key, 3)
    params = init_params(key)

    # Small case: single tile.
    n1, g1 = 16, 2
    feats1 = jax.random.normal(kf1, (n1, NODE_FEAT_DIM), jnp.float32)
    batch1 = jnp.array([0] * 9 + [1] * 7, dtype=jnp.int32)       # ptr = [0, 9, 16]
    check(feats1, batch1, g1, params, tile_n=1024)

    # Tiled case: multiple tiles + ragged tail (exercises padding/masking path).
    n2, g2 = 200, 3
    feats2 = jax.random.normal(kf2, (n2, NODE_FEAT_DIM), jnp.float32)
    batch2 = jnp.repeat(jnp.arange(g2, dtype=jnp.int32), jnp.array([70, 60, 70]),
                        total_repeat_length=n2)
    check(feats2, batch2, g2, params, tile_n=128)

    print("KERNEL_OK")
</pallas_src>

<mosaic_0001>
module attributes {stable_mosaic.version = 11 : i64} {
  func.func @classifier_kernel(%arg0: i32, %arg1: memref<16x64xf32, #tpu.memory_space<vmem>>, %arg2: memref<1x16xi32, #tpu.memory_space<vmem>>, %arg3: memref<64x64xf32, #tpu.memory_space<vmem>>, %arg4: memref<1x64xf32, #tpu.memory_space<vmem>>, %arg5: memref<64x32xf32, #tpu.memory_space<vmem>>, %arg6: memref<1x32xf32, #tpu.memory_space<vmem>>, %arg7: memref<32x3xf32, #tpu.memory_space<vmem>>, %arg8: memref<1x3xf32, #tpu.memory_space<vmem>>, %arg9: memref<2x3xf32, #tpu.memory_space<vmem>>, %arg10: memref<1x16xf32, #tpu.memory_space<vmem>>) attributes {dimension_semantics = [#tpu.dimension_semantics<arbitrary>], iteration_bounds = array<i64: 1>, scalar_prefetch = 0 : i64, scratch_operands = 0 : i64, tpu.core_type = #tpu.core_type<tc>, window_params = [{transform_indices = @transform_0, window_bounds = array<i64: 16, 64>}, {transform_indices = @transform_1, window_bounds = array<i64: 1, 16>}, {pipeline_mode = #tpu.pipeline_mode<synchronous>, transform_indices = @transform_2, window_bounds = array<i64: 64, 64>}, {pipeline_mode = #tpu.pipeline_mode<synchronous>, transform_indices = @transform_3, window_bounds = array<i64: 1, 64>}, {pipeline_mode = #tpu.pipeline_mode<synchronous>, transform_indices = @transform_4, window_bounds = array<i64: 64, 32>}, {pipeline_mode = #tpu.pipeline_mode<synchronous>, transform_indices = @transform_5, window_bounds = array<i64: 1, 32>}, {pipeline_mode = #tpu.pipeline_mode<synchronous>, transform_indices = @transform_6, window_bounds = array<i64: 32, 3>}, {pipeline_mode = #tpu.pipeline_mode<synchronous>, transform_indices = @transform_7, window_bounds = array<i64: 1, 3>}, {pipeline_mode = #tpu.pipeline_mode<synchronous>, transform_indices = @transform_8, window_bounds = array<i64: 2, 3>}, {transform_indices = @transform_9, window_bounds = array<i64: 1, 16>}]} {
    %c0_i32 = arith.constant 0 : i32
    %0 = arith.cmpi eq, %arg0, %c0_i32 : i32
    %1 = arith.extui %0 : i1 to i32
    %c0_i32_0 = arith.constant 0 : i32
    %2 = arith.cmpi ne, %1, %c0_i32_0 : i32
    scf.if %2 {
      %cst_32 = arith.constant 0.000000e+00 : f32
      %61 = vector.broadcast %cst_32 : f32 to vector<2x3xf32>
      %c0_33 = arith.constant 0 : index
      %c0_34 = arith.constant 0 : index
      %62 = vector.load %arg9[%c0_33, %c0_34] : memref<2x3xf32, #tpu.memory_space<vmem>>, vector<2x3xf32>
      tpu.vector_store %arg9[%c0_33, %c0_34], %61 {strides = array<i32>} : memref<2x3xf32, #tpu.memory_space<vmem>>, vector<2x3xf32>,
    } else {
    }
    %c0 = arith.constant 0 : index
    %c0_1 = arith.constant 0 : index
    %3 = vector.load %arg1[%c0, %c0_1] : memref<16x64xf32, #tpu.memory_space<vmem>>, vector<16x64xf32>
    %c0_2 = arith.constant 0 : index
    %c0_3 = arith.constant 0 : index
    %4 = vector.load %arg3[%c0_2, %c0_3] : memref<64x64xf32, #tpu.memory_space<vmem>>, vector<64x64xf32>
    %cst = arith.constant dense<0.000000e+00> : vector<16x64xf32>
    %5 = tpu.matmul %3, %4, %cst {dimension_numbers = #tpu.dot_dimension_numbers<[1], [0], [0], [1], [0, 0, 1, 1], [], []>} : vector<16x64xf32>, vector<64x64xf32>, vector<16x64xf32> -> vector<16x64xf32>
    %c0_4 = arith.constant 0 : index
    %c0_5 = arith.constant 0 : index
    %6 = vector.load %arg4[%c0_4, %c0_5] : memref<1x64xf32, #tpu.memory_space<vmem>>, vector<1x64xf32>
    %7 = vector.broadcast %6 : vector<1x64xf32> to vector<16x64xf32>
    %8 = arith.addf %5, %7 : vector<16x64xf32>
    %9 = arith.negf %8 : vector<16x64xf32>
    %10 = math.exp %9 : vector<16x64xf32>
    %cst_6 = arith.constant 1.000000e+00 : f32
    %11 = vector.broadcast %cst_6 : f32 to vector<16x64xf32>
    %12 = arith.addf %11, %10 : vector<16x64xf32>
    %13 = arith.divf %11, %12 : vector<16x64xf32>
    %14 = arith.mulf %8, %13 : vector<16x64xf32>
    %c0_7 = arith.constant 0 : index
    %c0_8 = arith.constant 0 : index
    %15 = vector.load %arg5[%c0_7, %c0_8] : memref<64x32xf32, #tpu.memory_space<vmem>>, vector<64x32xf32>
    %cst_9 = arith.constant dense<0.000000e+00> : vector<16x32xf32>
    %16 = tpu.matmul %14, %15, %cst_9 {dimension_numbers = #tpu.dot_dimension_numbers<[1], [0], [0], [1], [0, 0, 1, 1], [], []>} : vector<16x64xf32>, vector<64x32xf32>, vector<16x32xf32> -> vector<16x32xf32>
    %c0_10 = arith.constant 0 : index
    %c0_11 = arith.constant 0 : index
    %17 = vector.load %arg6[%c0_10, %c0_11] : memref<1x32xf32, #tpu.memory_space<vmem>>, vector<1x32xf32>
    %18 = vector.broadcast %17 : vector<1x32xf32> to vector<16x32xf32>
    %19 = arith.addf %16, %18 : vector<16x32xf32>
    %20 = arith.negf %19 : vector<16x32xf32>
    %21 = math.exp %20 : vector<16x32xf32>
    %cst_12 = arith.constant 1.000000e+00 : f32
    %22 = vector.broadcast %cst_12 : f32 to vector<16x32xf32>
    %23 = arith.addf %22, %21 : vector<16x32xf32>
    %24 = arith.divf %22, %23 : vector<16x32xf32>
    %25 = arith.mulf %19, %24 : vector<16x32xf32>
    %c0_13 = arith.constant 0 : index
    %c0_14 = arith.constant 0 : index
    %26 = vector.load %arg7[%c0_13, %c0_14] : memref<32x3xf32, #tpu.memory_space<vmem>>, vector<32x3xf32>
    %cst_15 = arith.constant dense<0.000000e+00> : vector<16x3xf32>
    %27 = tpu.matmul %25, %26, %cst_15 {dimension_numbers = #tpu.dot_dimension_numbers<[1], [0], [0], [1], [0, 0, 1, 1], [], []>} : vector<16x32xf32>, vector<32x3xf32>, vector<16x3xf32> -> vector<16x3xf32>
    %c0_16 = arith.constant 0 : index
    %c0_17 = arith.constant 0 : index
    %28 = vector.load %arg8[%c0_16, %c0_17] : memref<1x3xf32, #tpu.memory_space<vmem>>, vector<1x3xf32>
    %29 = vector.broadcast %28 : vector<1x3xf32> to vector<16x3xf32>
    %30 = arith.addf %27, %29 : vector<16x3xf32>
    %cst_18 = arith.constant 0.000000e+00 : f32
    %31 = vector.broadcast %cst_18 : f32 to vector<16x3xf32>
    %32 = arith.subf %31, %30 : vector<16x3xf32>
    %cst_19 = arith.constant dense<0xFF800000> : vector<16xf32>
    %33 = vector.multi_reduction <maximumf>, %32, %cst_19 [1] : vector<16x3xf32> to vector<16xf32>
    %34 = vector.shape_cast %33 : vector<16xf32> to vector<16x1xf32>
    %35 = vector.broadcast %34 : vector<16x1xf32> to vector<16x3xf32>
    %36 = arith.subf %32, %35 : vector<16x3xf32>
    %37 = math.exp %36 : vector<16x3xf32>
    %cst_20 = arith.constant dense<0.000000e+00> : vector<16xf32>
    %38 = vector.multi_reduction <add>, %37, %cst_20 [1] : vector<16x3xf32> to vector<16xf32>
    %39 = vector.shape_cast %38 : vector<16xf32> to vector<16x1xf32>
    %40 = tpu.reciprocal %39 {approx = true} : vector<16x1xf32> -> vector<16x1xf32>
    %41 = arith.mulf %39, %40 : vector<16x1xf32>
    %cst_21 = arith.constant 2.000000e+00 : f32
    %42 = vector.broadcast %cst_21 : f32 to vector<16x1xf32>
    %43 = arith.subf %42, %41 : vector<16x1xf32>
    %44 = arith.mulf %40, %43 : vector<16x1xf32>
    %45 = vector.broadcast %44 : vector<16x1xf32> to vector<16x3xf32>
    %46 = arith.mulf %37, %45 : vector<16x3xf32>
    %47 = arith.mulf %46, %30 : vector<16x3xf32>
    %cst_22 = arith.constant dense<0.000000e+00> : vector<16xf32>
    %48 = vector.multi_reduction <add>, %47, %cst_22 [1] : vector<16x3xf32> to vector<16xf32>
    %49 = vector.shape_cast %48 : vector<16xf32> to vector<1x16xf32>
    %c0_23 = arith.constant 0 : index
    %c0_24 = arith.constant 0 : index
    %50 = vector.load %arg10[%c0_23, %c0_24] : memref<1x16xf32, #tpu.memory_space<vmem>>, vector<1x16xf32>
    tpu.vector_store %arg10[%c0_23, %c0_24], %49 {strides = array<i32>} : memref<1x16xf32, #tpu.memory_space<vmem>>, vector<1x16xf32>,
    %c0_25 = arith.constant 0 : index
    %c0_26 = arith.constant 0 : index
    %51 = vector.load %arg2[%c0_25, %c0_26] : memref<1x16xi32, #tpu.memory_space<vmem>>, vector<1x16xi32>
    %52 = tpu.iota {dimensions = array<i32: 0>} : vector<2x16xi32>
    %53 = vector.broadcast %51 : vector<1x16xi32> to vector<2x16xi32>
    %54 = arith.cmpi eq, %52, %53 : vector<2x16xi32>
    %55 = arith.extui %54 : vector<2x16xi1> to vector<2x16xi32>
    %56 = arith.sitofp %55 : vector<2x16xi32> to vector<2x16xf32>
    %c0_27 = arith.constant 0 : index
    %c0_28 = arith.constant 0 : index
    %57 = vector.load %arg9[%c0_27, %c0_28] : memref<2x3xf32, #tpu.memory_space<vmem>>, vector<2x3xf32>
    %cst_29 = arith.constant dense<0.000000e+00> : vector<2x3xf32>
    %58 = tpu.matmul %56, %32, %cst_29 {dimension_numbers = #tpu.dot_dimension_numbers<[1], [0], [0], [1], [0, 0, 1, 1], [], []>} : vector<2x16xf32>, vector<16x3xf32>, vector<2x3xf32> -> vector<2x3xf32>
    %59 = arith.addf %57, %58 : vector<2x3xf32>
    %c0_30 = arith.constant 0 : index
    %c0_31 = arith.constant 0 : index
    %60 = vector.load %arg9[%c0_30, %c0_31] : memref<2x3xf32, #tpu.memory_space<vmem>>, vector<2x3xf32>
    tpu.vector_store %arg9[%c0_30, %c0_31], %59 {strides = array<i32>} : memref<2x3xf32, #tpu.memory_space<vmem>>, vector<2x3xf32>,
    return
  }
  func.func @transform_0(%arg0: i32) -> (i32, i32) {
    %c0_i32 = arith.constant 0 : i32
    %c0_i32_0 = arith.constant 0 : i32
    return %arg0, %c0_i32 : i32, i32
  }
  func.func @transform_1(%arg0: i32) -> (i32, i32) {
    %c0_i32 = arith.constant 0 : i32
    %c0_i32_0 = arith.constant 0 : i32
    return %c0_i32, %arg0 : i32, i32
  }
  func.func @transform_2(%arg0: i32) -> (i32, i32) {
    %c0_i32 = arith.constant 0 : i32
    %c0_i32_0 = arith.constant 0 : i32
    %c0_i32_1 = arith.constant 0 : i32
    return %c0_i32, %c0_i32_0 : i32, i32
  }
  func.func @transform_3(%arg0: i32) -> (i32, i32) {
    %c0_i32 = arith.constant 0 : i32
    %c0_i32_0 = arith.constant 0 : i32
    %c0_i32_1 = arith.constant 0 : i32
    return %c0_i32, %c0_i32_0 : i32, i32
  }
  func.func @transform_4(%arg0: i32) -> (i32, i32) {
    %c0_i32 = arith.constant 0 : i32
    %c0_i32_0 = arith.constant 0 : i32
    %c0_i32_1 = arith.constant 0 : i32
    return %c0_i32, %c0_i32_0 : i32, i32
  }
  func.func @transform_5(%arg0: i32) -> (i32, i32) {
    %c0_i32 = arith.constant 0 : i32
    %c0_i32_0 = arith.constant 0 : i32
    %c0_i32_1 = arith.constant 0 : i32
    return %c0_i32, %c0_i32_0 : i32, i32
  }
  func.func @transform_6(%arg0: i32) -> (i32, i32) {
    %c0_i32 = arith.constant 0 : i32
    %c0_i32_0 = arith.constant 0 : i32
    %c0_i32_1 = arith.constant 0 : i32
    return %c0_i32, %c0_i32_0 : i32, i32
  }
  func.func @transform_7(%arg0: i32) -> (i32, i32) {
    %c0_i32 = arith.constant 0 : i32
    %c0_i32_0 = arith.constant 0 : i32
    %c0_i32_1 = arith.constant 0 : i32
    return %c0_i32, %c0_i32_0 : i32, i32
  }
  func.func @transform_8(%arg0: i32) -> (i32, i32) {
    %c0_i32 = arith.constant 0 : i32
    %c0_i32_0 = arith.constant 0 : i32
    %c0_i32_1 = arith.constant 0 : i32
    return %c0_i32, %c0_i32_0 : i32, i32
  }
  func.func @transform_9(%arg0: i32) -> (i32, i32) {
    %c0_i32 = arith.constant 0 : i32
    %c0_i32_0 = arith.constant 0 : i32
    return %c0_i32, %arg0 : i32, i32
  }
}

</mosaic_0001>

<bundles_post_ra>
// kernel: tpu_custom_call.1
= control target key start
LH: loop header
LB: loop body
LE: loop exit
PB: predicated region body
PF: predicated region fallthrough
CT: control target
= control target key end

     0   :  { %15 = vsyncpa [#allocation3], 0  ;;  %vm56_vm0 = vcmask 523264   ;;  %s925_s0 = inlined_call_operand.vmem [shape: f32[16,64], index: 0, kind: input, shape index: {}]   ;;  %s926_s1 = inlined_call_operand.vmem [shape: s32[1,16], index: 1, kind: input, shape index: {}]   ;;  %s927_s2 = inlined_call_operand.vmem [shape: f32[64,64], index: 2, kind: input, shape index: {}]   ;;  %s928_s3 = inlined_call_operand.vmem [shape: f32[1,64], index: 3, kind: input, shape index: {}]   ;;  %s929_s4 = inlined_call_operand.vmem [shape: f32[64,32], index: 4, kind: input, shape index: {}]   ;;  %s930_s5 = inlined_call_operand.vmem [shape: f32[1,32], index: 5, kind: input, shape index: {}]   ;;  %s931_s6 = inlined_call_operand.vmem [shape: f32[32,3], index: 6, kind: input, shape index: {}]   ;;  %s932_s7 = inlined_call_operand.vmem [shape: f32[1,3], index: 7, kind: input, shape index: {}]   ;;  %s933_s8 = inlined_call_operand.hbm [shape: f32[2,3], index: 8, kind: output, shape index: {0}]   ;;  %s934_s9 = inlined_call_operand.hbm [shape: f32[1,16], index: 9, kind: output, shape index: {1}]  }
   0x1   :  { %v41_v0 = vld [vmem:[%s927_s2] sm:$0xff]  ;;  %v42_v1 = vld [vmem:[%s927_s2 + $0x8] sm:$0xff]  ;;  %v43_v2 = vld [vmem:[%s927_s2 + $0x10] sm:$0xff] }
   0x2   :  { %v629_v3 = vpack.c.bf16 %v42_v1, %v41_v0  ;;  %v44_v4 = vld [vmem:[%s927_s2 + $0x18] sm:$0xff]  ;;  %v45_v6 = vld [vmem:[%s927_s2 + $0x20] sm:$0xff]  ;;  %v46_v7 = vld [vmem:[%s927_s2 + $0x28] sm:$0xff] }
   0x3   :  { %v633_v5 = vpack.c.bf16 %v44_v4, %v43_v2  ;;  %v39_v8 = vld [vmem:[%s925_s0] sm:$0xff] }
   0x4   :  { %630 = vmatprep.subr.bf16.mxu0 %v629_v3  ;;  %589 = vmatprep.mubr.msk.f32.mxu0 %vm56_vm0, %v39_v8 }
   0x5   :  { %16 = vsyncpa [#allocation5], 0  ;;  %632 = vmatpush3.bf16.msra.mxu0 %v629_v3  ;;  %v637_v9 = vpack.c.bf16 %v46_v7, %v45_v6  ;;  %v47_v10 = vld [vmem:[%s927_s2 + $0x30] sm:$0xff]  ;;  %v48_v11 = vld [vmem:[%s927_s2 + $0x38] sm:$0xff]  ;;  %vm273_vm1 = vcmask 261120   ;;  %v749_v62 = vmov 0.0|0.0  }
   0x6   :  { %634 = vmatprep.subr.bf16.mxu0 %v633_v5  ;;  %v641_v12 = vpack.c.bf16 %v48_v11, %v47_v10  ;;  %v40_v13 = vld [vmem:[%s925_s0 + $0x8] sm:$0xff]  ;;  %v152_v14 = vld [vmem:[%s929_s4] sm:$0xff]  ;;  %v154_v17 = vld [vmem:[%s929_s4 + $0x10] sm:$0xff]  ;;  %vm357_vm2 = vcmask 23552   ;;  %vm37_vm3 = vcmask 17408   ;;  %v750_v10 = vmov 0.0  }
   0x7   :  { %v153_v15 = vld [vmem:[%s929_s4 + $0x8] sm:$0xff]  ;;  %v155_v18 = vld [vmem:[%s929_s4 + $0x18] sm:$0xff]  ;;  %v156_v20 = vld [vmem:[%s929_s4 + $0x20] sm:$0xff]  ;;  %38 = vst.msk [vmem:[#allocation2] sm:$0x3] %vm37_vm3, %v750_v10  ;;  %vm751_vm4 = vmmov 0  }
   0x8   :  { %v645_v16 = vpack.c.bf16 %v153_v15, %v152_v14  ;;  %v649_v19 = vpack.c.bf16 %v155_v18, %v154_v17  ;;  %v157_v21 = vld [vmem:[%s929_s4 + $0x28] sm:$0xff]  ;;  %v158_v23 = vld [vmem:[%s929_s4 + $0x30] sm:$0xff]  ;;  %v159_v24 = vld [vmem:[%s929_s4 + $0x38] sm:$0xff]  ;;  %vm423_vm5 = vcmask 130048  }
   0x9   :  { %636 = vmatpush3.bf16.msra.mxu0 %v633_v5  ;;  %v653_v22 = vpack.c.bf16 %v157_v21, %v156_v20  ;;  %v657_v25 = vpack.c.bf16 %v159_v24, %v158_v23  ;;  %v528_v26 = vld [vmem:[%s928_s3] ss:$0 sm:$0xff]  ;;  %v263_v42 = vld [vmem:[%s931_s6 + $0x8] sm:$0xff]  ;;  %v264_v44 = vld [vmem:[%s931_s6 + $0x10] sm:$0xff] }
   0xa   :  { %638 = vmatprep.subr.bf16.mxu0 %v637_v9  ;;  %646 = vmatprep.subr.bf16.mxu1 %v645_v16  ;;  %v262_v41 = vld [vmem:[%s931_s6] sm:$0xff]  ;;  %v265_v45 = vld [vmem:[%s931_s6 + $0x18] sm:$0xff] }
   0xb   :  { %648 = vmatpush3.bf16.msra.mxu1 %v645_v16  ;;  %v661_v43 = vpack.c.bf16 %v263_v42, %v262_v41  ;;  %v665_v46 = vpack.c.bf16 %v265_v45, %v264_v44  ;;  %v533_v47 = vld [vmem:[%s930_s5] ss:$0 sm:$0xff] }
   0xc   :  { %650 = vmatprep.subr.bf16.mxu1 %v649_v19  ;;  %v538_v63 = vld [vmem:[%s932_s7] ss:$0 sm:$0xff] }
   0xd   :  { %640 = vmatpush3.bf16.msra.mxu0 %v637_v9  ;;  %v396_v9 = vlaneseq  ;;  %v541_v11 = vld [vmem:[%s926_s1] ss:$0 sm:$0xff]  ;;  %s752_s1 = smov [#allocation2]  }
   0xe   :  { %642 = vmatprep.subr.bf16.mxu0 %v641_v12  ;;  %v422_v41 = vld [vmem:[#allocation2] sm:$0x3]  ;;  %s506_s2 = sshll.u32 %s752_s1, 4  ;;  %s507_s2 = int_to_ptr.vmem [resolvable:$true] %s506_s2 }
   0xf   :  { %652 = vmatpush3.bf16.msra.mxu1 %v649_v19  ;;  %s701_s12 = scalar_lea.vmem %s507_s2, 32  ;;  %p706_p1 = scmp.lt.s32.totalorder %s507_s2, %s507_s2 }
  0x10   :  { %654 = vmatprep.subr.bf16.mxu1 %v653_v22  ;;  %p702_p0 = scmp.ne.s32.totalorder %s507_s2, %s701_s12  ;;  %p707_p2 = scmp.lt.s32.totalorder %s701_s12, %s701_s12 }
  0x11   :  { %644 = vmatpush3.bf16.msra.mxu0 %v641_v12  ;;  %v890_v12 = vshrl.u32 %v396_v9, 7 }
  0x12   :  { %662 = vmatprep.subr.bf16.mxu0 %v661_v43  ;;  %p708_p3 = por %p707_p2, %p706_p1 }
  0x13   :  { %656 = vmatpush3.bf16.msra.mxu1 %v653_v22  ;;  %vm419_vm6 = vcmp.eq.s32.totalorder %v890_v12, %v541_v11 }
  0x14   :  { %590 = vmatmul.mubr.msk.f32.vlgmr.msra.gmra.mrb[0].mxu0 %vm56_vm0, %v40_v13  ;;  %658 = vmatprep.subr.bf16.mxu1 %v657_v25  ;;  %v542_v13 = vsel %vm419_vm6, 1.0, %v750_v10  ;;  %p709_p4 = pnand %p708_p3, %p702_p0 }
  0x15   :  { %664 = vmatpush3.bf16.msra.mxu0 %v661_v43 }
  0x16   :  { %666 = vmatprep.subr.bf16.mxu0 %v665_v46 }
  0x17   :  { %660 = vmatpush3.bf16.msra.mxu1 %v657_v25 }
  0x18   :  { %669 = vmatprep.subr.bf16.mxu1 %v749_v62 }
  0x19   :  { %668 = vmatpush3.bf16.msra.mxu0 %v665_v46 }
  0xe7   :  { %v591_v27 = vpop.f32.mrb[0].mxu0 }
  0xe8   :  { %v135_v28 = vadd.f32 %v591_v27, %v528_v26  ;;  %v129_v29 = vpop.f32.mrb[1].mxu0 }
  0xe9   :  { %v130_v30 = vadd.f32 %v528_v26, %v129_v29 }
  0xea   :  { %v532_v31 = vmul.f32 -1.442695, %v135_v28 }
  0xeb   :  { %v531_v32 = vmul.f32 -1.442695, %v130_v30 }
  0xec   :  { %677 = vpow2.f32 %v532_v31 }
  0xed   :  { %679 = vpow2.f32 %v531_v32 }
  0xf6   :  { %v678_v33 = vpop.eup %677 }
  0xf7   :  { %v680_v34 = vpop.eup %679  ;;  %v145_v35 = vadd.f32 1.0, %v678_v33 }
  0xf8   :  { %v144_v36 = vadd.f32 1.0, %v680_v34 }
  0xf9   :  { %681 = vrcp.f32 %v145_v35 }
  0xfa   :  { %683 = vrcp.f32 %v144_v36 }
 0x103   :  { %v682_v37 = vpop.eup %681 }
 0x104   :  { %v684_v38 = vpop.eup %683  ;;  %v151_v40 = vmul.f32 %v682_v37, %v135_v28 }
 0x105   :  { %v150_v39 = vmul.f32 %v684_v38, %v130_v30 }
 0x107   :  { %608 = vmatprep.mubr.msk.f32.mxu1 %vm56_vm0, %v150_v39 }
 0x108   :  { %609 = vmatmul.mubr.msk.f32.vlgmr.msra.gmra.mrb[0].mxu1 %vm56_vm0, %v151_v40 }
 0x109   :  { %626 = vmatprep.mubr.msk.f32.mxu1 %vm751_vm4, %v750_v10 }
 0x1db   :  { %v610_v48 = vpop.f32.mrb[0].mxu1 }
 0x1dc   :  { %v245_v49 = vadd.f32 %v610_v48, %v533_v47  ;;  %v239_v50 = vpop.f32.mrb[1].mxu1 }
 0x1dd   :  { %v240_v51 = vadd.f32 %v533_v47, %v239_v50 }
 0x1de   :  { %v537_v52 = vmul.f32 -1.442695, %v245_v49 }
 0x1df   :  { %v536_v53 = vmul.f32 -1.442695, %v240_v51 }
 0x1e0   :  { %685 = vpow2.f32 %v537_v52 }
 0x1e1   :  { %687 = vpow2.f32 %v536_v53 }
 0x1ea   :  { %v686_v54 = vpop.eup %685 }
 0x1eb   :  { %v688_v55 = vpop.eup %687  ;;  %v255_v56 = vadd.f32 1.0, %v686_v54 }
 0x1ec   :  { %v254_v57 = vadd.f32 1.0, %v688_v55 }
 0x1ed   :  { %689 = vrcp.f32 %v255_v56 }
 0x1ee   :  { %691 = vrcp.f32 %v254_v57 }
 0x1f7   :  { %v690_v58 = vpop.eup %689 }
 0x1f8   :  { %v692_v59 = vpop.eup %691  ;;  %v261_v61 = vmul.f32 %v690_v58, %v245_v49 }
 0x1f9   :  { %v260_v60 = vmul.f32 %v692_v59, %v240_v51 }
 0x1fb   :  { %619 = vmatprep.mubr.msk.f32.mxu0 %vm273_vm1, %v260_v60 }
 0x1fc   :  { %620 = vmatmul.mubr.msk.f32.vlgmr.msra.gmra.mrb[2].mxu0 %vm273_vm1, %v261_v61 }
 0x2cf   :  { %v621_v0 = vpop.f32.mrb[2].mxu0 }
 0x2d0   :  { %v352_v1 = vadd.f32 %v621_v0, %v538_v63  ;;  %v346_v2 = vpop.f32.mrb[3].mxu0 }
 0x2d1   :  { %v347_v3 = vadd.f32 %v538_v63, %v346_v2 }
 0x2d2   :  { %v356_v4 = vsub.f32 0.0, %v352_v1 }
 0x2d3   :  { %v355_v5 = vsub.f32 0.0, %v347_v3 }
 0x2d4   :  { %v361_v8 = vsel %vm357_vm2, %v356_v4, -inf }
 0x2d5   :  { %v670_v6 = vpack.c.bf16 %v356_v4, %v355_v5  ;;  %v358_v7 = vsel %vm357_vm2, %v355_v5, -inf }
 0x2d6   :  { %359 = vmax.xlane.f32.xlu0 %v358_v7 }
 0x2d7   :  { %671 = vmatpush3.bf16.msra.mxu1 %v670_v6 }
 0x2da   :  { %362 = vmax.xlane.f32.xlu0 %v361_v8  ;;  %627 = vmatmul.mubr.msk.f32.vlgmr.msra.gmra.mrb[2].mxu1 %vm423_vm5, %v542_v13 }
 0x363   :  { %v360_v14 = vpop.xlane.xlu0 %359 }
 0x364   :  { %v364_v15 = vsub.f32 %v355_v5, %v360_v14 }
 0x366   :  { %v366_v16 = vmul.f32 1.442695, %v364_v15 }
 0x367   :  { %v363_v17 = vpop.xlane.xlu0 %362 }
 0x368   :  { %693 = vpow2.f32 %v366_v16  ;;  %v365_v18 = vsub.f32 %v356_v4, %v363_v17 }
 0x36a   :  { %v368_v19 = vmul.f32 1.442695, %v365_v18 }
 0x36c   :  { %695 = vpow2.f32 %v368_v19 }
 0x372   :  { %v694_v20 = vpop.eup %693 }
 0x373   :  { %v370_v21 = vsel %vm357_vm2, %v694_v20, 0.0 }
 0x374   :  { %371 = vadd.xlane.f32.xlu1 %v370_v21 }
 0x376   :  { %v696_v22 = vpop.eup %695 }
 0x377   :  { %v373_v23 = vsel %vm357_vm2, %v696_v22, 0.0 }
 0x378   :  { %374 = vadd.xlane.f32.xlu1 %v373_v23 }
 0x3ad   :  { %v493_v40 = vpop.f32.mrb[2].mxu1 }
 0x3ae   :  { %v628_v42 = vpop.f32.mrb[3].mxu1  ;;  %v497_v43 = vadd.f32 %v493_v40, %v422_v41 }
 0x3b0   :  { %499 = vst.msk [vmem:[#allocation2] sm:$0x3] %vm37_vm3, %v497_v43 }
 0x401   :  { %v372_v24 = vpop.xlane.xlu1 %371 }
 0x402   :  { %697 = vrcp.f32 %v372_v24 }
 0x405   :  { %v375_v25 = vpop.xlane.xlu1 %374 }
 0x406   :  { %699 = vrcp.f32 %v375_v25 }
 0x40c   :  { %v698_v26 = vpop.eup %697 }
 0x40d   :  { %v378_v27 = vmul.f32 %v698_v26, %v372_v24 }
 0x40f   :  { %v380_v28 = vsub.f32 2.0, %v378_v27 }
 0x410   :  { %v700_v29 = vpop.eup %699 }
 0x411   :  { %v382_v30 = vmul.f32 %v698_v26, %v380_v28  ;;  %v379_v31 = vmul.f32 %v700_v29, %v375_v25 }
 0x413   :  { %v381_v32 = vsub.f32 2.0, %v379_v31  ;;  %v384_v33 = vmul.f32 %v694_v20, %v382_v30 }
 0x415   :  { %v383_v34 = vmul.f32 %v700_v29, %v381_v32  ;;  %v386_v35 = vmul.f32 %v384_v33, %v347_v3 }
 0x417   :  { %v388_v36 = vsel %vm357_vm2, %v386_v35, 0.0  ;;  %v385_v37 = vmul.f32 %v696_v22, %v383_v34 }
 0x418   :  { %389 = vadd.xlane.f32.xlu0 %v388_v36 }
 0x419   :  { %v387_v38 = vmul.f32 %v385_v37, %v352_v1 }
 0x41b   :  { %v391_v39 = vsel %vm357_vm2, %v387_v38, 0.0 }
 0x41c   :  { %392 = vadd.xlane.f32.xlu1 %v391_v39 }
 0x41d   :  { %712 = shalt.err (!%p709_p4)
}
 0x41e   :  { %s713_s0 = scalar_lea.hbm %s933_s8, 32 }
 0x41f   :  { %p714_p5 = scmp.ne.s32.totalorder %s933_s8, %s713_s0  ;;  %p717_p6 = scmp.lt.u32.totalorder %s713_s0, %s933_s8 }
 0x421   :  { %p719_p7 = pnand %p717_p6, %p714_p5 }
 0x423   :  { %722 = shalt.err (!%p719_p7)
}
 0x424   :  { %509 = dma.vmem_to_hbm [thread:$0]  %s507_s2, 32, %s933_s8, [#allocation3]   ;;  %v397_v44 = vand.u32 127, %v396_v9  ;;  %vm407_vm7 = vcmask 130112   ;;  %vm410_vm8 = vcmask 122880  }
 0x425   :  { %s753_s21 = smov [#allocation4]  }
 0x426   :  { %v402_v45 = vadd.s32 4294967288, %v397_v44  ;;  %v400_v46 = vsub.s32 %v397_v44, %v890_v12  ;;  %s516_s22 = sshll.u32 %s753_s21, 4  ;;  %s517_s22 = int_to_ptr.vmem [resolvable:$true] %s516_s22 }
 0x427   :  { %s723_s23 = scalar_lea.vmem %s517_s22, 16  ;;  %s727_s8 = scalar_lea.vmem %s517_s22, 32 }
 0x428   :  { %v405_v47 = vsub.s32 %v402_v45, %v890_v12  ;;  %p724_p8 = scmp.ne.s32.totalorder %s517_s22, %s723_s23  ;;  %p728_p9 = scmp.lt.s32.totalorder %s517_s22, %s517_s22 }
 0x429   :  { %p729_p10 = scmp.lt.s32.totalorder %s727_s8, %s723_s23 }
 0x42b   :  { %p730_p11 = por %p729_p10, %p728_p9 }
 0x42d   :  { %p731_p12 = pnand %p730_p11, %p724_p8 }
 0x4a5   :  { %v390_v48 = vpop.xlane.xlu0 %389 }
 0x4a6   :  { %v401_v50 = vrot.slane %v390_v48, %v400_v46 }
 0x4a9   :  { %v393_v49 = vpop.xlane.xlu1 %392 }
 0x4aa   :  { %v406_v51 = vrot.slane %v393_v49, %v405_v47 }
 0x4ac   :  { %v408_v52 = vsel %vm407_vm7, %v406_v51, %v401_v50 }
 0x4ad   :  { %411 = vst.msk [vmem:[#allocation4] sm:$0x1] %vm410_vm8, %v408_v52 }
 0x4ae   :  { %734 = shalt.err (!%p731_p12)
}
 0x4af   :  { %s735_s24 = scalar_lea.hbm %s934_s9, 16 }
 0x4b0   :  { %p736_p13 = scmp.ne.s32.totalorder %s934_s9, %s735_s24  ;;  %p739_p0 = scmp.lt.u32.totalorder %s735_s24, %s934_s9 }
 0x4b2   :  { %p741_p1 = pnand %p739_p0, %p736_p13 }
 0x4b4   :  { %744 = shalt.err (!%p741_p1)
}
 0x4b5   :  { %519 = dma.vmem_to_hbm [thread:$0]  %s517_s22, 16, %s934_s9, [#allocation5]  }
 0x4b6   :  { %745 = dma.done.wait [#allocation3], 32  }
 0x4b7   :  { %746 = vsyncadd [#allocation3], 4294967264 }
 0x4b8   :  { %747 = dma.done.wait [#allocation5], 16  }
 0x4b9   :  { %748 = vsyncadd [#allocation5], 4294967280 }
 0x4ba   :  { %526 = vsyncpa [#allocation3], 1 }
 0x4bb   :  { %527 = vsyncpa [#allocation5], 1 }

</bundles_post_ra>
